<compile_context>
chip_gen: v6e
topology: v6e:2x2x1
jax: 0.10.0
libtpu: 0.0.40
codegen_flags: <defaults>
</compile_context>

<pallas_src>
import jax
import jax.numpy as jnp
from jax.experimental import pallas as pl
from jax.experimental.pallas import tpu as pltpu


def _round_up(x, m):
    return ((x + m - 1) // m) * m


def _qnet_kernel(x_ref, w1_ref, b1_ref, w2_ref, b2_ref, out_ref):
    # ---- layer 1: Linear + ReLU --------------------------------------------
    # MXU matmul: bf16 operands, f32 accumulation.
    h = jnp.dot(x_ref[...], w1_ref[...], preferred_element_type=jnp.float32)
    # Bias add + ReLU on the VPU in f32 (v5e has no bf16 VPU path).
    h = jnp.maximum(h + b1_ref[...], 0.0)
    # ---- layer 2: quantile head --------------------------------------------
    q = jnp.dot(h.astype(jnp.bfloat16), w2_ref[...],
                preferred_element_type=jnp.float32)
    out_ref[...] = (q + b2_ref[...]).astype(out_ref.dtype)


def quantile_network_forward(x, w1, b1, w2, b2, action_dim, num_quantiles,
                             *, block_b=512):
    """x: (B, state_dim) f32; w1: (state_dim, hidden); b1: (1, hidden);
    w2: (hidden, action_dim*num_quantiles); b2: (1, out_dim).
    Returns (B, action_dim, num_quantiles) float32."""
    B, S = x.shape
    H = w1.shape[1]
    out_dim = action_dim * num_quantiles

    # Lane/sublane-friendly padded sizes.
    Hp = _round_up(H, 128)                 # hidden -> lane-dense
    Op = _round_up(out_dim, 128)           # output -> unmasked stores
    TB = min(block_b, _round_up(B, 8))     # batch tile, multiple of 8 sublanes
    Bp = _round_up(B, TB)
    grid = (Bp // TB,)

    # Zero padding keeps real outputs bit-identical: padded hidden units get
    # bias 0 -> ReLU(0)=0 -> contribute nothing; padded output columns and
    # padded batch rows are sliced away below.
    x_p = jnp.zeros((Bp, S), jnp.bfloat16).at[:B, :].set(x.astype(jnp.bfloat16))
    w1_p = jnp.zeros((S, Hp), jnp.bfloat16).at[:, :H].set(w1.astype(jnp.bfloat16))
    b1_p = jnp.zeros((1, Hp), jnp.float32).at[:, :H].set(b1.astype(jnp.float32))
    w2_p = jnp.zeros((Hp, Op), jnp.bfloat16).at[:H, :out_dim].set(
        w2.astype(jnp.bfloat16))
    b2_p = jnp.zeros((1, Op), jnp.float32).at[:, :out_dim].set(
        b2.astype(jnp.float32))

    flops = 2 * Bp * (S * Hp + Hp * Op)
    bytes_accessed = (x_p.size * 2 + w1_p.size * 2 + w2_p.size * 2
                      + b1_p.size * 4 + b2_p.size * 4 + Bp * Op * 4)

    q_flat = pl.pallas_call(
        _qnet_kernel,
        out_shape=jax.ShapeDtypeStruct((Bp, Op), jnp.float32),
        grid=grid,
        in_specs=[
            pl.BlockSpec((TB, S), lambda i: (i, 0)),    # x: batch-tiled
            pl.BlockSpec((S, Hp), lambda i: (0, 0)),    # w1: resident in VMEM
            pl.BlockSpec((1, Hp), lambda i: (0, 0)),    # b1: resident
            pl.BlockSpec((Hp, Op), lambda i: (0, 0)),   # w2: resident
            pl.BlockSpec((1, Op), lambda i: (0, 0)),    # b2: resident
        ],
        out_specs=pl.BlockSpec((TB, Op), lambda i: (i, 0)),
        compiler_params=pltpu.CompilerParams(
            dimension_semantics=("parallel",),          # megacore split on v7x
            vmem_limit_bytes=32 * 1024 * 1024,
        ),
        cost_estimate=pl.CostEstimate(
            flops=flops, transcendentals=0, bytes_accessed=bytes_accessed),
    )(x_p, w1_p, b1_p, w2_p, b2_p)

    # Glue: drop padding, then the same semantics as torch's .view(B, -1, Q).
    return q_flat[:B, :out_dim].reshape(B, action_dim, num_quantiles)


def init_params(key, state_dim, hidden, action_dim, num_quantiles):
    """Deterministic synthetic parameters (PyTorch-like uniform fan-in init),
    stored already-transposed as (in_features, out_features)."""
    k1, k2, k3, k4 = jax.random.split(key, 4)
    out_dim = action_dim * num_quantiles
    bound1 = 1.0 / jnp.sqrt(state_dim)
    bound2 = 1.0 / jnp.sqrt(hidden)
    w1 = jax.random.uniform(k1, (state_dim, hidden), jnp.float32, -bound1, bound1)
    b1 = jax.random.uniform(k2, (1, hidden), jnp.float32, -bound1, bound1)
    w2 = jax.random.uniform(k3, (hidden, out_dim), jnp.float32, -bound2, bound2)
    b2 = jax.random.uniform(k4, (1, out_dim), jnp.float32, -bound2, bound2)
    return w1, b1, w2, b2


if __name__ == "__main__":
    # Small shapes consistent with the module's forward.
    B, state_dim, hidden = 2, 8, 32
    action_dim, num_quantiles = 4, 51

    key = jax.random.PRNGKey(0)
    kx, kp = jax.random.split(key)
    x = jax.random.normal(kx, (B, state_dim), dtype=jnp.float32)
    w1, b1, w2, b2 = init_params(kp, state_dim, hidden, action_dim, num_quantiles)

    out = quantile_network_forward(x, w1, b1, w2, b2, action_dim, num_quantiles)
    out = jax.block_until_ready(out)
    assert out.shape == (B, action_dim, num_quantiles)

    # Reference 1: same numerics as the kernel (bf16 MXU operands, f32 accum).
    def _bf(a):
        return a.astype(jnp.bfloat16).astype(jnp.float32)

    h_ref = jnp.maximum(_bf(x) @ _bf(w1) + b1, 0.0)
    ref_bf16 = (_bf(h_ref) @ _bf(w2) + b2).reshape(B, action_dim, num_quantiles)
    assert jnp.allclose(out, ref_bf16, atol=2e-3, rtol=2e-3)

    # Reference 2: full-precision PyTorch-semantics forward (loose tolerance;
    # the only difference is bf16 operand rounding into the MXU).
    ref_f32 = (jnp.maximum(x @ w1 + b1, 0.0) @ w2 + b2).reshape(
        B, action_dim, num_quantiles)
    assert jnp.allclose(out, ref_f32, atol=5e-2, rtol=5e-2)

    print("KERNEL_OK")
</pallas_src>

<mosaic_0001>
module attributes {stable_mosaic.version = 11 : i64} {
  func.func @_qnet_kernel(%arg0: i32, %arg1: memref<8x8xbf16, #tpu.memory_space<vmem>>, %arg2: memref<8x128xbf16, #tpu.memory_space<vmem>>, %arg3: memref<1x128xf32, #tpu.memory_space<vmem>>, %arg4: memref<128x256xbf16, #tpu.memory_space<vmem>>, %arg5: memref<1x256xf32, #tpu.memory_space<vmem>>, %arg6: memref<8x256xf32, #tpu.memory_space<vmem>>) attributes {dimension_semantics = [#tpu.dimension_semantics<parallel>], iteration_bounds = array<i64: 1>, scalar_prefetch = 0 : i64, scratch_operands = 0 : i64, tpu.core_type = #tpu.core_type<tc>, window_params = [{transform_indices = @transform_0, window_bounds = array<i64: 8, 8>}, {pipeline_mode = #tpu.pipeline_mode<synchronous>, transform_indices = @transform_1, window_bounds = array<i64: 8, 128>}, {pipeline_mode = #tpu.pipeline_mode<synchronous>, transform_indices = @transform_2, window_bounds = array<i64: 1, 128>}, {pipeline_mode = #tpu.pipeline_mode<synchronous>, transform_indices = @transform_3, window_bounds = array<i64: 128, 256>}, {pipeline_mode = #tpu.pipeline_mode<synchronous>, transform_indices = @transform_4, window_bounds = array<i64: 1, 256>}, {transform_indices = @transform_5, window_bounds = array<i64: 8, 256>}]} {
    %c0 = arith.constant 0 : index
    %c0_0 = arith.constant 0 : index
    %0 = vector.load %arg1[%c0, %c0_0] : memref<8x8xbf16, #tpu.memory_space<vmem>>, vector<8x8xbf16>
    %c0_1 = arith.constant 0 : index
    %c0_2 = arith.constant 0 : index
    %1 = vector.load %arg2[%c0_1, %c0_2] : memref<8x128xbf16, #tpu.memory_space<vmem>>, vector<8x128xbf16>
    %cst = arith.constant dense<0.000000e+00> : vector<8x128xf32>
    %2 = tpu.matmul %0, %1, %cst {dimension_numbers = #tpu.dot_dimension_numbers<[1], [0], [0], [1], [0, 0, 1, 1], [], []>} : vector<8x8xbf16>, vector<8x128xbf16>, vector<8x128xf32> -> vector<8x128xf32>
    %c0_3 = arith.constant 0 : index
    %c0_4 = arith.constant 0 : index
    %3 = vector.load %arg3[%c0_3, %c0_4] : memref<1x128xf32, #tpu.memory_space<vmem>>, vector<1x128xf32>
    %4 = vector.broadcast %3 : vector<1x128xf32> to vector<8x128xf32>
    %5 = arith.addf %2, %4 : vector<8x128xf32>
    %cst_5 = arith.constant 0.000000e+00 : f32
    %6 = vector.broadcast %cst_5 : f32 to vector<8x128xf32>
    %7 = arith.maximumf %5, %6 : vector<8x128xf32>
    %8 = arith.truncf %7 : vector<8x128xf32> to vector<8x128xbf16>
    %c0_6 = arith.constant 0 : index
    %c0_7 = arith.constant 0 : index
    %9 = vector.load %arg4[%c0_6, %c0_7] : memref<128x256xbf16, #tpu.memory_space<vmem>>, vector<128x256xbf16>
    %cst_8 = arith.constant dense<0.000000e+00> : vector<8x256xf32>
    %10 = tpu.matmul %8, %9, %cst_8 {dimension_numbers = #tpu.dot_dimension_numbers<[1], [0], [0], [1], [0, 0, 1, 1], [], []>} : vector<8x128xbf16>, vector<128x256xbf16>, vector<8x256xf32> -> vector<8x256xf32>
    %c0_9 = arith.constant 0 : index
    %c0_10 = arith.constant 0 : index
    %11 = vector.load %arg5[%c0_9, %c0_10] : memref<1x256xf32, #tpu.memory_space<vmem>>, vector<1x256xf32>
    %12 = vector.broadcast %11 : vector<1x256xf32> to vector<8x256xf32>
    %13 = arith.addf %10, %12 : vector<8x256xf32>
    %c0_11 = arith.constant 0 : index
    %c0_12 = arith.constant 0 : index
    %14 = vector.load %arg6[%c0_11, %c0_12] : memref<8x256xf32, #tpu.memory_space<vmem>>, vector<8x256xf32>
    tpu.vector_store %arg6[%c0_11, %c0_12], %13 {strides = array<i32>} : memref<8x256xf32, #tpu.memory_space<vmem>>, vector<8x256xf32>,
    return
  }
  func.func @transform_0(%arg0: i32) -> (i32, i32) {
    %c0_i32 = arith.constant 0 : i32
    %c0_i32_0 = arith.constant 0 : i32
    return %arg0, %c0_i32 : i32, i32
  }
  func.func @transform_1(%arg0: i32) -> (i32, i32) {
    %c0_i32 = arith.constant 0 : i32
    %c0_i32_0 = arith.constant 0 : i32
    %c0_i32_1 = arith.constant 0 : i32
    return %c0_i32, %c0_i32_0 : i32, i32
  }
  func.func @transform_2(%arg0: i32) -> (i32, i32) {
    %c0_i32 = arith.constant 0 : i32
    %c0_i32_0 = arith.constant 0 : i32
    %c0_i32_1 = arith.constant 0 : i32
    return %c0_i32, %c0_i32_0 : i32, i32
  }
  func.func @transform_3(%arg0: i32) -> (i32, i32) {
    %c0_i32 = arith.constant 0 : i32
    %c0_i32_0 = arith.constant 0 : i32
    %c0_i32_1 = arith.constant 0 : i32
    return %c0_i32, %c0_i32_0 : i32, i32
  }
  func.func @transform_4(%arg0: i32) -> (i32, i32) {
    %c0_i32 = arith.constant 0 : i32
    %c0_i32_0 = arith.constant 0 : i32
    %c0_i32_1 = arith.constant 0 : i32
    return %c0_i32, %c0_i32_0 : i32, i32
  }
  func.func @transform_5(%arg0: i32) -> (i32, i32) {
    %c0_i32 = arith.constant 0 : i32
    %c0_i32_0 = arith.constant 0 : i32
    return %arg0, %c0_i32 : i32, i32
  }
}

</mosaic_0001>

<bundles_post_ra>
// kernel: tpu_custom_call.1
= control target key start
LH: loop header
LB: loop body
LE: loop exit
PB: predicated region body
PF: predicated region fallthrough
CT: control target
= control target key end

     0   :  { %10 = vsyncpa [#allocation3], 0  ;;  %s487_s0 = inlined_call_operand.hbm [shape: bf16[8,8], index: 0, kind: input, shape index: {}]   ;;  %s488_s1 = inlined_call_operand.hbm [shape: bf16[8,128], index: 1, kind: input, shape index: {}]   ;;  %s489_s2 = inlined_call_operand.vmem [shape: f32[1,128], index: 2, kind: input, shape index: {}]   ;;  %s490_s3 = inlined_call_operand.hbm [shape: bf16[128,256], index: 3, kind: input, shape index: {}]   ;;  %s491_s4 = inlined_call_operand.vmem [shape: f32[1,256], index: 4, kind: input, shape index: {}]   ;;  %s492_s5 = inlined_call_operand.hbm [shape: f32[8,256], index: 5, kind: output, shape index: {}]  }
   0x1   :  { %11 = vsyncpa [#allocation6], 0 }
   0x2   :  { %12 = vsyncpa [#allocation4], 0  ;;  %s430_s18 = smov [#allocation5]   ;;  %s431_s20 = smov [#allocation2]  }
   0x3   :  { %s29_s19 = sshll.u32 %s430_s18, 4  ;;  %s19_s21 = sshll.u32 %s431_s20, 4  ;;  %s30_s19 = int_to_ptr.vmem [resolvable:$true] %s29_s19  ;;  %s20_s21 = int_to_ptr.vmem [resolvable:$true] %s19_s21 }
   0x4   :  { %s352_s22 = scalar_lea.vmem %s30_s19, 64  ;;  %p357_p1 = scmp.lt.s32.totalorder %s30_s19, %s30_s19 }
   0x5   :  { %p353_p0 = scmp.ne.s32.totalorder %s30_s19, %s352_s22  ;;  %p358_p2 = scmp.lt.s32.totalorder %s352_s22, %s352_s22 }
   0x7   :  { %p359_p3 = por %p358_p2, %p357_p1 }
   0x9   :  { %p360_p4 = pnand %p359_p3, %p353_p0 }
   0xb   :  { %363 = shalt.err (!%p360_p4)
}
   0xc   :  { %32 = dma.hbm_to_vmem [thread:$0]  %s488_s1, 64, %s30_s19, [#allocation6]  }
   0xd   :  { %s372_s25 = scalar_lea.vmem %s20_s21, 64  ;;  %p377_p6 = scmp.lt.s32.totalorder %s20_s21, %s20_s21 }
   0xe   :  { %p373_p5 = scmp.ne.s32.totalorder %s20_s21, %s372_s25  ;;  %p378_p7 = scmp.lt.s32.totalorder %s372_s25, %s372_s25 }
  0x10   :  { %p379_p8 = por %p378_p7, %p377_p6 }
  0x12   :  { %p380_p9 = pnand %p379_p8, %p373_p5 }
  0x14   :  { %383 = shalt.err (!%p380_p9)
}
  0x15   :  { %22 = dma.hbm_to_vmem [thread:$0]  %s487_s0, 64, %s20_s21, [#allocation3]  }
  0x16   :  { %s432_s28 = smov [#allocation7]  }
  0x17   :  { %s40_s29 = sshll.u32 %s432_s28, 4  ;;  %s41_s29 = int_to_ptr.vmem [resolvable:$true] %s40_s29 }
  0x18   :  { %s392_s30 = scalar_lea.vmem %s41_s29, 2048  ;;  %p397_p11 = scmp.lt.s32.totalorder %s41_s29, %s41_s29 }
  0x19   :  { %p393_p10 = scmp.ne.s32.totalorder %s41_s29, %s392_s30  ;;  %p398_p12 = scmp.lt.s32.totalorder %s392_s30, %s392_s30 }
  0x1b   :  { %p399_p13 = por %p398_p12, %p397_p11 }
  0x1d   :  { %p400_p0 = pnand %p399_p13, %p393_p10 }
  0x1f   :  { %403 = shalt.err (!%p400_p0)
}
  0x20   :  { %s433_s1 = smov 128   ;;  %s434_s6 = smov 8  }
  0x21   :  { %46 = dma.hbm_to_vmem [thread:$0]  %s490_s3, 2048, %s41_s29, [#allocation6], %s433_s1, %s433_s1, %s434_s6  }
  0x22   :  { %424 = dma.done.wait [#allocation3], 64  }
  0x23   :  { %425 = vsyncadd [#allocation3], 4294967232 }
  0x24   :  { %426 = dma.done.wait [#allocation6], 2112  }
  0x25   :  { %427 = vsyncadd [#allocation6], 4294965184  ;;  %v435_v0 = vmov 0.0   ;;  %vm436_vm0 = vmmov 0   ;;  %vm72_vm1 = vcmask 1043456   ;;  %vm68_vm2 = vcmask 64512  }
  0x26   :  { %305 = vmatprep.subr.bf16.mxu0 %v435_v0  ;;  %307 = vmatprep.mubr.msk.bf16.mxu0 %vm436_vm0, %v435_v0  ;;  %v60_v1 = vld [vmem:[#allocation5] sm:$0xf]  ;;  %v59_v2 = vld [vmem:[#allocation2] sm:$0xf]  ;;  %v323_v6 = vld [vmem:[#allocation7 + $0x64] ss:$8 sps:$4 sm:$0xff]   ;;  %v136_v29 = vlaneseq }
  0x27   :  { %v74_v3 = vsel %vm72_vm1, %v60_v1, 0  ;;  %v320_v4 = vld [vmem:[#allocation7 + $0x74] ss:$8 sps:$4 sm:$0xff]   ;;  %v322_v5 = vld [vmem:[#allocation7 + $0x70] ss:$8 sps:$4 sm:$0xff]   ;;  %v437_v20 = vmov 0  }
  0x28   :  { %306 = vmatpush3.bf16.msra.mxu0 %v74_v3  ;;  %226 = vmatprep.subr.bf16.mxu1 %v320_v4  ;;  %v325_v7 = vld [vmem:[#allocation7 + $0x60] ss:$8 sps:$4 sm:$0xff]   ;;  %v326_v8 = vld [vmem:[#allocation7 + $0x54] ss:$8 sps:$4 sm:$0xff]   ;;  %v328_v9 = vld [vmem:[#allocation7 + $0x50] ss:$8 sps:$4 sm:$0xff]  }
  0x29   :  { %227 = vmatpush1.bf16.msra.mxu1 %v322_v5  ;;  %v329_v10 = vld [vmem:[#allocation7 + $0x44] ss:$8 sps:$4 sm:$0xff]   ;;  %v331_v11 = vld [vmem:[#allocation7 + $0x40] ss:$8 sps:$4 sm:$0xff]   ;;  %v332_v12 = vld [vmem:[#allocation7 + $0x34] ss:$8 sps:$4 sm:$0xff]   ;;  %258 = vmatprep.mubr.bf16.mxu1 %v437_v20 }
  0x2a   :  { %228 = vmatprep.subr.bf16.mxu1 %v323_v6  ;;  %v334_v13 = vld [vmem:[#allocation7 + $0x30] ss:$8 sps:$4 sm:$0xff]   ;;  %v335_v14 = vld [vmem:[#allocation7 + $0x24] ss:$8 sps:$4 sm:$0xff]   ;;  %v337_v15 = vld [vmem:[#allocation7 + $0x20] ss:$8 sps:$4 sm:$0xff]  }
  0x2b   :  { %308 = vmatmul.mubr.msk.bf16.vlgmr.msra.gmra.mxu0 %vm68_vm2, %v59_v2  ;;  %v338_v16 = vld [vmem:[#allocation7 + $0x14] ss:$8 sps:$4 sm:$0xff]   ;;  %v340_v17 = vld [vmem:[#allocation7 + $0x10] ss:$8 sps:$4 sm:$0xff]   ;;  %v341_v18 = vld [vmem:[#allocation7 + $0x4] ss:$8 sps:$4 sm:$0xff]  }
  0x2c   :  { %v343_v19 = vld [vmem:[#allocation7] ss:$8 sps:$4 sm:$0xff]   ;;  %v285_v21 = vld [vmem:[%s489_s2] ss:$0 sm:$0xff]  ;;  %v137_v30 = vshrl.u32 %v136_v29, 7  ;;  %s438_s2 = smov [#allocation8]  }
  0x2d   :  { %229 = vmatpush1.bf16.msra.mxu1 %v325_v7  ;;  %v134_v32 = vld [vmem:[%s491_s4] sm:$0x3]  ;;  %s275_s11 = sshll.u32 %s438_s2, 4  ;;  %s276_s11 = int_to_ptr.vmem [resolvable:$true] %s275_s11 }
  0x2e   :  { %230 = vmatprep.subr.bf16.mxu1 %v326_v8  ;;  %v138_v31 = vsub.s32 0, %v137_v30  ;;  %v142_v33 = vsub.s32 1, %v137_v30  ;;  %s404_s12 = scalar_lea.vmem %s276_s11, 256  ;;  %p409_p2 = scmp.lt.s32.totalorder %s276_s11, %s276_s11 }
  0x2f   :  { %p405_p1 = scmp.ne.s32.totalorder %s276_s11, %s404_s12  ;;  %p410_p3 = scmp.lt.s32.totalorder %s404_s12, %s404_s12 }
  0x30   :  { %v139_v34 = vrot.slane %v134_v32, %v138_v31  ;;  %v143_v35 = vrot.slane %v134_v32, %v142_v33 }
  0x31   :  { %231 = vmatpush1.bf16.msra.mxu1 %v328_v9  ;;  %p411_p4 = por %p410_p3, %p409_p2 }
  0x32   :  { %232 = vmatprep.subr.bf16.mxu1 %v329_v10 }
  0x33   :  { %p412_p5 = pnand %p411_p4, %p405_p1 }
  0x35   :  { %233 = vmatpush1.bf16.msra.mxu1 %v331_v11 }
  0x36   :  { %234 = vmatprep.subr.bf16.mxu1 %v332_v12 }
  0x39   :  { %235 = vmatpush1.bf16.msra.mxu1 %v334_v13 }
  0x3a   :  { %236 = vmatprep.subr.bf16.mxu1 %v335_v14 }
  0x3d   :  { %237 = vmatpush1.bf16.msra.mxu1 %v337_v15 }
  0x3e   :  { %238 = vmatprep.subr.bf16.mxu1 %v338_v16 }
  0x41   :  { %239 = vmatpush1.bf16.msra.mxu1 %v340_v17 }
  0x42   :  { %240 = vmatprep.subr.bf16.mxu1 %v341_v18 }
  0x45   :  { %241 = vmatpush1.bf16.msra.mxu1 %v343_v19 }
  0xeb   :  { %v110_v22 = vpop.f32.mrf.mxu0 }
  0xec   :  { %v111_v23 = vadd.f32 %v285_v21, %v110_v22 }
  0xed   :  { %v309_v24 = vpop.f32.mrf.mxu0 }
  0xee   :  { %v116_v25 = vmax.f32 %v111_v23, 0.0 }
  0xef   :  { %v113_v26 = vpop.f32.mrf.mxu0 }
  0xf0   :  { %v117_v27 = vpack.c.bf16 %v116_v25, %v116_v25 }
  0xf1   :  { %v310_v28 = vpop.f32.mrf.mxu0 }
  0xf2   :  { %259 = vmatmul.mubr.bf16.vlgmr.msra.gmra.mxu1 %v117_v27 }
 0x1b2   :  { %v260_v36 = vpop.f32.mrf.mxu1 }
 0x1b3   :  { %v261_v37 = vadd.f32 %v260_v36, %v139_v34 }
 0x1b4   :  { %v262_v38 = vpop.f32.mrf.mxu1 }
 0x1b5   :  { %267 = vst [vmem:[#allocation8] sm:$0xff] %v261_v37  ;;  %v263_v39 = vadd.f32 %v262_v38, %v143_v35 }
 0x1b6   :  { %v264_v40 = vpop.f32.mrf.mxu1 }
 0x1b7   :  { %268 = vst [vmem:[#allocation8 + $0x8] sm:$0xff] %v263_v39 }
 0x1b8   :  { %v265_v41 = vpop.f32.mrf.mxu1 }
 0x1b9   :  { %415 = shalt.err (!%p412_p5)
}
 0x1ba   :  { %278 = dma.vmem_to_hbm [thread:$0]  %s276_s11, 256, %s492_s5, [#allocation4]  }
 0x1bb   :  { %428 = dma.done.wait [#allocation4], 256  }
 0x1bc   :  { %429 = vsyncadd [#allocation4], 4294967040 }
 0x1bd   :  { %282 = vsyncpa [#allocation3], 1 }
 0x1be   :  { %283 = vsyncpa [#allocation6], 1 }
 0x1bf   :  { %284 = vsyncpa [#allocation4], 1 }

</bundles_post_ra>
